<compile_context>
chip_gen: v7x
topology: tpu7x:2x2x1
jax: 0.10.0
libtpu: 0.0.40
codegen_flags: <defaults>
</compile_context>

<pallas_src>
import functools

import jax
import jax.numpy as jnp
from jax import lax
from jax.experimental import pallas as pl
from jax.experimental.pallas import tpu as pltpu


# ----------------------------------------------------------------------------
# Pallas kernel: y = f @ w + b  (1x1 conv over channels),  g = mean_HW(f) @ w + b
# ----------------------------------------------------------------------------
def _proj_mean_kernel(f_ref, w_ref, b_ref, y_ref, g_ref, *, bpt, hw):
    # f_ref : (bpt, HW, Cf)   channels-last features for bpt complete batches
    # w_ref : (Cf, E)         1x1-conv weight as a matmul weight (resident)
    # b_ref : (1, E)          bias (f32, resident)
    # y_ref : (bpt, HW, E)    projected features (compute dtype)
    # g_ref : (bpt, 1, E)     per-batch spatial mean (f32)
    f = f_ref[...]
    w = w_ref[...]
    b = b_ref[...].astype(jnp.float32)                       # (1, E)
    cf = f.shape[-1]
    e = w.shape[-1]

    if hw % 8 == 0:
        # Sublane-aligned: flatten (bpt, HW) into one matmul M dimension.
        f2 = f.reshape(bpt * hw, cf)
        y = jnp.dot(f2, w, preferred_element_type=jnp.float32) + b
        y_ref[...] = y.reshape(bpt, hw, e).astype(y_ref.dtype)
    else:
        # HW not a multiple of 8: avoid the dim-merge relayout, one dot per batch.
        for bb in range(bpt):
            yb = jnp.dot(f[bb], w, preferred_element_type=jnp.float32) + b
            y_ref[bb] = yb.astype(y_ref.dtype)

    # Global spatial mean via linearity: mean_HW(f @ w + b) == mean_HW(f) @ w + b.
    # Touches only the small (bpt, Cf) reduced operand instead of the big y tile.
    fm = jnp.mean(f.astype(jnp.float32), axis=1)              # (bpt, Cf)
    g = jnp.dot(fm, w.astype(jnp.float32),
                preferred_element_type=jnp.float32) + b        # (bpt, E)
    g_ref[...] = g.reshape(bpt, 1, e)


# ----------------------------------------------------------------------------
# Tiling / VMEM sizing helpers
# ----------------------------------------------------------------------------
def _vmem_budget_bytes():
    """Per-generation scoped-VMEM budget: ~60% of physical, capped at 96 MiB.
    v5e/v6e (128 MiB) -> ~76 MiB; v7x (64 MiB) -> ~38 MiB; fallback assumes 64 MiB."""
    try:
        cap = int(pltpu.get_tpu_info().vmem_capacity_bytes)
    except Exception:  # no TPU info available at trace time
        cap = 64 << 20
    return int(min(cap * 0.6, 96 << 20))


def _choose_bpt(B, HW, Cf, E, in_item, out_item, budget, *, min_steps=4, max_bpt=None):
    """Largest whole-batch group per grid step that fits the double-buffered
    VMEM budget while keeping >= min_steps grid steps (v7x: 2 TCs need >= 2
    steps each for cross-iteration DMA overlap)."""
    min_steps = min(min_steps, B)
    max_bpt = B if max_bpt is None else min(max_bpt, B)

    def footprint(bpt):
        stream = bpt * HW * Cf * in_item + bpt * HW * E * out_item + bpt * E * 4
        resident = Cf * E * in_item + E * 4
        return 2 * (stream + resident)          # double-buffered

    best = 1
    for bpt in range(1, max_bpt + 1):
        if B % bpt:
            continue
        if (B // bpt) < min_steps:
            break
        if footprint(bpt) <= budget:
            best = bpt
    return best, footprint(best)


# ----------------------------------------------------------------------------
# Hot-path wrapper
# ----------------------------------------------------------------------------
def proj_and_global_mean(feats_nhwc, w, b, *, compute_dtype=jnp.float32,
                         y_dtype=None, min_steps=4):
    """feats_nhwc: (B, Hf, Wf, Cf); w: (Cf, E); b: (E,)
       -> y_nhwc: (B, Hf, Wf, E) [y_dtype], g: (B, 1, E) [f32]."""
    B, Hf, Wf, Cf = feats_nhwc.shape
    E = w.shape[1]
    HW = Hf * Wf
    y_dtype = compute_dtype if y_dtype is None else y_dtype

    w_c = w.astype(compute_dtype)
    b_c = b.astype(jnp.float32).reshape(1, E)
    feats = feats_nhwc.reshape(B, HW, Cf)                      # free (contiguous merge)
    if feats.dtype != compute_dtype:
        feats = feats.astype(compute_dtype)

    in_item = jnp.dtype(compute_dtype).itemsize
    out_item = jnp.dtype(y_dtype).itemsize
    budget = _vmem_budget_bytes()
    # If HW is not sublane-aligned the kernel unrolls per batch; keep that small.
    max_bpt = None if HW % 8 == 0 else 8
    bpt, fp = _choose_bpt(B, HW, Cf, E, in_item, out_item, budget,
                          min_steps=min_steps, max_bpt=max_bpt)
    grid = (B // bpt,)
    vmem_limit = int(min(max(2 * fp, 16 << 20), budget))

    kernel = functools.partial(_proj_mean_kernel, bpt=bpt, hw=HW)

    y, g = pl.pallas_call(
        kernel,
        out_shape=(
            jax.ShapeDtypeStruct((B, HW, E), y_dtype),
            jax.ShapeDtypeStruct((B, 1, E), jnp.float32),
        ),
        grid_spec=pltpu.PrefetchScalarGridSpec(
            num_scalar_prefetch=0,
            grid=grid,
            in_specs=[
                pl.BlockSpec((bpt, HW, Cf), lambda i: (i, 0, 0)),   # streaming feats
                pl.BlockSpec((Cf, E), lambda i: (0, 0)),            # weight resident
                pl.BlockSpec((1, E), lambda i: (0, 0)),             # bias resident
            ],
            out_specs=[
                pl.BlockSpec((bpt, HW, E), lambda i: (i, 0, 0)),
                pl.BlockSpec((bpt, 1, E), lambda i: (i, 0, 0)),
            ],
        ),
        compiler_params=pltpu.CompilerParams(
            dimension_semantics=("parallel",),
            vmem_limit_bytes=vmem_limit,
        ),
    )(feats, w_c, b_c)

    y = y.reshape(B, Hf, Wf, E)
    return y, g


# ----------------------------------------------------------------------------
# Plain-JAX glue (backbone) + module forward
# ----------------------------------------------------------------------------
def simple_backbone(x_nchw, conv_w, conv_b, *, out_dtype=jnp.float32):
    """3x3 stride-2 conv + ReLU. Takes NCHW (PyTorch convention) but emits
    NHWC in `out_dtype` so the Pallas hot path needs no extra HBM transpose
    or cast pass over the feature map."""
    y = lax.conv_general_dilated(
        x_nchw, conv_w,
        window_strides=(2, 2),
        padding=((1, 1), (1, 1)),
        dimension_numbers=("NCHW", "OIHW", "NHWC"),
    )
    y = jnp.maximum(y + conv_b.reshape(1, 1, 1, -1), 0.0)
    return y.astype(out_dtype)   # fused into the conv epilogue by XLA


def hybrid_embed_forward(x_nchw, params, *, compute_dtype=jnp.float32,
                         y_dtype=None, channels_last_out=False):
    """Mirrors HybridEmbed.forward: backbone -> proj(1x1 conv) -> spatial mean."""
    feats = simple_backbone(x_nchw, params["bb_w"], params["bb_b"],
                            out_dtype=compute_dtype)            # (B, Hf, Wf, Cf)
    y_nhwc, g = proj_and_global_mean(
        feats, params["proj_w"], params["proj_b"],
        compute_dtype=compute_dtype, y_dtype=y_dtype)
    global_x = jnp.transpose(g, (0, 2, 1))                       # (B, E, 1), f32
    if channels_last_out:
        # Consumers that accept NHWC skip the final HBM transpose entirely.
        return y_nhwc, global_x
    x_out = jnp.transpose(y_nhwc, (0, 3, 1, 2))                  # (B, E, Hf, Wf)
    return x_out, global_x


def init_params(key, in_chans=4, feature_dim=8, embed_dim=32):
    k1, k2, k3, k4 = jax.random.split(key, 4)
    bb_w = 0.1 * jax.random.normal(k1, (feature_dim, in_chans, 3, 3), jnp.float32)
    bb_b = 0.1 * jax.random.normal(k2, (feature_dim,), jnp.float32)
    # proj is nn.Conv2d(feature_dim, embed_dim, kernel_size=1) == matmul over channels
    proj_w = 0.1 * jax.random.normal(k3, (feature_dim, embed_dim), jnp.float32)
    proj_b = 0.1 * jax.random.normal(k4, (embed_dim,), jnp.float32)
    return {"bb_w": bb_w, "bb_b": bb_b, "proj_w": proj_w, "proj_b": proj_b}


if __name__ == "__main__":
    key = jax.random.PRNGKey(0)
    kx, kp = jax.random.split(key)

    B, C, H, W = 2, 4, 16, 16
    feature_dim, embed_dim = 8, 32
    x = jax.random.normal(kx, (B, C, H, W), jnp.float32)
    params = init_params(kp, in_chans=C, feature_dim=feature_dim, embed_dim=embed_dim)

    # f32 path (exact PyTorch semantics; also the v5e configuration)
    fwd_f32 = jax.jit(functools.partial(hybrid_embed_forward, compute_dtype=jnp.float32))
    x_out, global_x = fwd_f32(x, params)
    jax.block_until_ready((x_out, global_x))

    # Pure-JAX reference for the Pallas hot path
    feats_nhwc = simple_backbone(x, params["bb_w"], params["bb_b"], out_dtype=jnp.float32)
    ref_y_nhwc = jnp.einsum("bhwc,ce->bhwe", feats_nhwc, params["proj_w"]) + params["proj_b"]
    ref_x = jnp.transpose(ref_y_nhwc, (0, 3, 1, 2))              # (B, E, Hf, Wf)
    ref_g = ref_x.mean(axis=(2, 3))[:, :, None]                  # (B, E, 1)

    assert x_out.shape == (B, embed_dim, H // 2, W // 2)
    assert global_x.shape == (B, embed_dim, 1)
    assert jnp.allclose(x_out, ref_x, atol=1e-5, rtol=1e-5), "proj mismatch (f32)"
    assert jnp.allclose(global_x, ref_g, atol=1e-5, rtol=1e-5), "global mean mismatch (f32)"

    # bf16 path (recommended on v6e/v7x): bf16 operands + bf16 y writeback,
    # f32 accumulation and f32 global mean; loose tolerance on the check.
    fwd_bf16 = jax.jit(functools.partial(hybrid_embed_forward, compute_dtype=jnp.bfloat16))
    x_bf, g_bf = fwd_bf16(x, params)
    jax.block_until_ready((x_bf, g_bf))
    assert x_bf.dtype == jnp.bfloat16
    assert g_bf.dtype == jnp.float32
    assert jnp.allclose(x_bf.astype(jnp.float32), ref_x, atol=3e-2, rtol=3e-2), "proj mismatch (bf16)"
    assert jnp.allclose(g_bf, ref_g, atol=3e-2, rtol=3e-2), "global mean mismatch (bf16)"

    print("KERNEL_OK")
</pallas_src>

<mosaic_0001>
module attributes {stable_mosaic.version = 11 : i64} {
  func.func @_proj_mean_kernel(%arg0: i32, %arg1: memref<1x64x8xf32, #tpu.memory_space<vmem>>, %arg2: memref<8x32xf32, #tpu.memory_space<vmem>>, %arg3: memref<1x32xf32, #tpu.memory_space<vmem>>, %arg4: memref<1x64x32xf32, #tpu.memory_space<vmem>>, %arg5: memref<1x1x32xf32, #tpu.memory_space<vmem>>) attributes {dimension_semantics = [#tpu.dimension_semantics<parallel>], iteration_bounds = array<i64: 2>, scalar_prefetch = 0 : i64, scratch_operands = 0 : i64, tpu.core_type = #tpu.core_type<tc>, window_params = [{transform_indices = @transform_0, window_bounds = array<i64: 1, 64, 8>}, {pipeline_mode = #tpu.pipeline_mode<synchronous>, transform_indices = @transform_1, window_bounds = array<i64: 8, 32>}, {pipeline_mode = #tpu.pipeline_mode<synchronous>, transform_indices = @transform_2, window_bounds = array<i64: 1, 32>}, {transform_indices = @transform_3, window_bounds = array<i64: 1, 64, 32>}, {transform_indices = @transform_4, window_bounds = array<i64: 1, 1, 32>}]} {
    %c0 = arith.constant 0 : index
    %c0_0 = arith.constant 0 : index
    %c0_1 = arith.constant 0 : index
    %0 = vector.load %arg1[%c0, %c0_0, %c0_1] : memref<1x64x8xf32, #tpu.memory_space<vmem>>, vector<1x64x8xf32>
    %c0_2 = arith.constant 0 : index
    %c0_3 = arith.constant 0 : index
    %1 = vector.load %arg2[%c0_2, %c0_3] : memref<8x32xf32, #tpu.memory_space<vmem>>, vector<8x32xf32>
    %c0_4 = arith.constant 0 : index
    %c0_5 = arith.constant 0 : index
    %2 = vector.load %arg3[%c0_4, %c0_5] : memref<1x32xf32, #tpu.memory_space<vmem>>, vector<1x32xf32>
    %3 = vector.shape_cast %0 : vector<1x64x8xf32> to vector<64x8xf32>
    %cst = arith.constant dense<0.000000e+00> : vector<64x32xf32>
    %4 = tpu.matmul %3, %1, %cst {dimension_numbers = #tpu.dot_dimension_numbers<[1], [0], [0], [1], [0, 0, 1, 1], [], []>} : vector<64x8xf32>, vector<8x32xf32>, vector<64x32xf32> -> vector<64x32xf32>
    %5 = vector.broadcast %2 : vector<1x32xf32> to vector<64x32xf32>
    %6 = arith.addf %4, %5 : vector<64x32xf32>
    %7 = vector.shape_cast %6 : vector<64x32xf32> to vector<1x64x32xf32>
    %c0_6 = arith.constant 0 : index
    %c0_7 = arith.constant 0 : index
    %c0_8 = arith.constant 0 : index
    %8 = vector.load %arg4[%c0_6, %c0_7, %c0_8] : memref<1x64x32xf32, #tpu.memory_space<vmem>>, vector<1x64x32xf32>
    tpu.vector_store %arg4[%c0_6, %c0_7, %c0_8], %7 {strides = array<i32>} : memref<1x64x32xf32, #tpu.memory_space<vmem>>, vector<1x64x32xf32>,
    %cst_9 = arith.constant dense<0.000000e+00> : vector<1x8xf32>
    %9 = vector.multi_reduction <add>, %0, %cst_9 [1] : vector<1x64x8xf32> to vector<1x8xf32>
    %cst_10 = arith.constant 6.400000e+01 : f32
    %10 = vector.broadcast %cst_10 : f32 to vector<1x8xf32>
    %11 = arith.divf %9, %10 : vector<1x8xf32>
    %cst_11 = arith.constant dense<0.000000e+00> : vector<1x32xf32>
    %12 = tpu.matmul %11, %1, %cst_11 {dimension_numbers = #tpu.dot_dimension_numbers<[1], [0], [0], [1], [0, 0, 1, 1], [], []>} : vector<1x8xf32>, vector<8x32xf32>, vector<1x32xf32> -> vector<1x32xf32>
    %13 = arith.addf %12, %2 : vector<1x32xf32>
    %14 = vector.shape_cast %13 : vector<1x32xf32> to vector<1x1x32xf32>
    %c0_12 = arith.constant 0 : index
    %c0_13 = arith.constant 0 : index
    %c0_14 = arith.constant 0 : index
    %15 = vector.load %arg5[%c0_12, %c0_13, %c0_14] : memref<1x1x32xf32, #tpu.memory_space<vmem>>, vector<1x1x32xf32>
    tpu.vector_store %arg5[%c0_12, %c0_13, %c0_14], %14 {strides = array<i32>} : memref<1x1x32xf32, #tpu.memory_space<vmem>>, vector<1x1x32xf32>,
    return
  }
  func.func @transform_0(%arg0: i32) -> (i32, i32, i32) {
    %c0_i32 = arith.constant 0 : i32
    %c0_i32_0 = arith.constant 0 : i32
    %c0_i32_1 = arith.constant 0 : i32
    return %arg0, %c0_i32, %c0_i32_0 : i32, i32, i32
  }
  func.func @transform_1(%arg0: i32) -> (i32, i32) {
    %c0_i32 = arith.constant 0 : i32
    %c0_i32_0 = arith.constant 0 : i32
    %c0_i32_1 = arith.constant 0 : i32
    return %c0_i32, %c0_i32_0 : i32, i32
  }
  func.func @transform_2(%arg0: i32) -> (i32, i32) {
    %c0_i32 = arith.constant 0 : i32
    %c0_i32_0 = arith.constant 0 : i32
    %c0_i32_1 = arith.constant 0 : i32
    return %c0_i32, %c0_i32_0 : i32, i32
  }
  func.func @transform_3(%arg0: i32) -> (i32, i32, i32) {
    %c0_i32 = arith.constant 0 : i32
    %c0_i32_0 = arith.constant 0 : i32
    %c0_i32_1 = arith.constant 0 : i32
    return %arg0, %c0_i32, %c0_i32_0 : i32, i32, i32
  }
  func.func @transform_4(%arg0: i32) -> (i32, i32, i32) {
    %c0_i32 = arith.constant 0 : i32
    %c0_i32_0 = arith.constant 0 : i32
    %c0_i32_1 = arith.constant 0 : i32
    return %arg0, %c0_i32, %c0_i32_0 : i32, i32, i32
  }
}

</mosaic_0001>

<bundles_post_ra>
// kernel: hybrid_embed_forward.1
= control target key start
LH: loop header
LB: loop body
LE: loop exit
PB: predicated region body
PF: predicated region fallthrough
CT: control target
= control target key end

     0   :  { %10 = vsyncpa [#allocation3], 0  ;;  %s983_s0 = inlined_call_operand.vmem [shape: f32[2,64,8], index: 0, kind: input, shape index: {}]   ;;  %s984_s1 = inlined_call_operand.vmem [shape: f32[8,32], index: 1, kind: input, shape index: {}]   ;;  %s985_s2 = inlined_call_operand.vmem [shape: f32[1,32], index: 2, kind: input, shape index: {}]   ;;  %s986_s3 = inlined_call_operand.hbm [shape: f32[2,64,32], index: 3, kind: output, shape index: {0}]   ;;  %s987_s4 = inlined_call_operand.hbm [shape: f32[2,1,32], index: 4, kind: output, shape index: {1}]  }
   0x1   :  { %12 = vsyncpa [#allocation3 + $0x1], 0 }
   0x2   :  { %13 = vsyncpa [#allocation5], 0 }
   0x3   :  { %15 = vsyncpa [#allocation5 + $0x1], 0  ;;  %s811_s15 = smov 0   ;;  %s813_s16 = smov 0  }
   0x4   :  { %s815_s17 = smov 0   ;;  %s817_s18 = smov 0  }
   0x5 LB: > { %s832_s19 = sadd.s32 4294967295, %s778_s18   ;;  %s580_s20 = sadd.s32 4294967294, %s778_s18   ;;  %s778_s18 = sphi %s817_s18, %s993_s18   ;;  %s774_s17 = sphi %s815_s17, %s992_s17   ;;  %s770_s16 = sphi %s813_s16, %s991_s16   ;;  %s766_s15 = sphi %s811_s15, %s990_s15  }
   0x6   : > { %s836_s21 = sadd.s32 1, %s778_s18   ;;  %s96_s22 = sadd.s32 1, %s774_s17 }
   0x7   : > { %s93_s23 = ssub.s32 %s778_s18, %s836_s21  ;;  %p106_p0 = scmp.ne.s32.totalorder %s774_s17, %s770_s16 }
   0x8   : > { %p94_p1 = scmp.eq.s32.totalorder %s93_s23, 0  ;;  %p107_p2 = scmp.eq.s32.totalorder %s832_s19, 1 }
   0x9   : > { %p112_p3 = scmp.ne.s32.totalorder %s770_s16, %s766_s15  ;;  %p113_p4 = scmp.eq.s32.totalorder %s580_s20, 1 }
   0xa   : > { %s847_s24 = scalar_select %p94_p1, %s774_s17, %s96_s22  }
   0xb   : > { %p849_p5 = por %p107_p2, %p106_p0  ;;  %p853_p6 = por %p113_p4, %p112_p3 }
   0xc   : > { %p583_p7 = scmp.ge.s32.totalorder %s778_s18, 1  ;;  %p171_p8 = scmp.lt.s32.totalorder %s778_s18, 3 }
   0xe   : > { %p172_p9 = pnand %p583_p7, %p171_p8 }
   0xf   : > { %v214_v0 = vld [vmem:[%s984_s1] sm:$0xff] (!%p172_p9)  ;;  %p201_p10 = scmp.lt.s32.totalorder (!%p172_p9), %s832_s19, 1  ;;  %v780_v1 = vmov (!%p172_p9), 0.0   ;;  %vm222_vm0 = vcmask (!%p172_p9), 64512   ;;  %vm781_vm1 = vmmov (!%p172_p9), 0   ;;  %v217_v32 = vlaneseq (!%p172_p9)  ;;  %s885_s8 = sand.u32 (!%p172_p9), 1, %s770_s16  }
  0x10   : > { %175 = sbr.rel (%p172_p9) target bundleno = 292 (0x124), region = 32  ;;  %615 = vmatprep.subr.mxu0 (!%p172_p9), %v214_v0  ;;  %634 = vmatprep.subr.mxu1 (!%p172_p9), %v214_v0  ;;  %v890_v35 = vld [vmem:[%s985_s2] sm:$0x1] (!%p172_p9)  ;;  %s584_s11 = sshll.u32 (!%p172_p9), %s885_s8, 6  ;;  %vm352_vm2 = vcmask (!%p172_p9), 261120  }
  0x11   : > { %616 = vmatpush3.msra.mxu0 (!%p172_p9), %v214_v0  ;;  %635 = vmatpush3.msra.mxu1 (!%p172_p9), %v214_v0  ;;  %v218_v33 = vshrl.u32 (!%p172_p9), %v217_v32, 7  ;;  %s194_s12 = scalar_lea.vmem (!%p172_p9), [#allocation2], %s584_s11  ;;  %s603_s13 = sshll.u32 (!%p172_p9), %s832_s19, 10 }
  0x12   : > { %629 = vmatprep.subr.mxu1 (!%p172_p9), %v780_v1  ;;  %s477_s14 = sshll.u32 (!%p172_p9), %s194_s12, 4  ;;  %s904_s23 = scalar_lea.hbm (!%p172_p9), %s986_s3, %s603_s13  ;;  %s906_s14 = int_to_ptr.vmem [resolvable:$true] %s477_s14 }
  0x13   : > { %v219_v34 = vsub.s32 (!%p172_p9), 0, %v218_v33  ;;  %s460_s27 = scalar_lea.sflag (!%p172_p9), [#allocation3], %s885_s8  ;;  %s684_s28 = scalar_lea.vmem (!%p172_p9), %s906_s14, 1024 }
  0x14   : > { %p685_p11 = scmp.ne.s32.totalorder (!%p172_p9), %s906_s14, %s684_s28 }
  0x15   : > { %v220_v36 = vrot.slane (!%p172_p9), %v890_v35, %v219_v34 }
  0x16   : > { %p686_p12 = pnand (!%p172_p9), %p685_p11, %p849_p5 }
  0x17   : > { %s202_s29 = scalar_select %p201_p10, %s832_s19, 1 }
  0x18   : > { %p687_p13 = pneg %p686_p12 }
  0x19   : > { %s602_s30 = sshll.u32 %s202_s29, 6  ;;  %s782_s29 = smov [#allocation2]  }
  0x1a   : > { %s205_s7 = scalar_lea.vmem %s983_s0, %s602_s30  ;;  %s688_s30 = sshll.u32 %s782_s29, 4  ;;  %s689_s30 = int_to_ptr.vmem [resolvable:$false] %s688_s30 }
  0x1b   : > { %v206_v2 = vld [vmem:[%s205_s7] sm:$0xff]  ;;  %v207_v3 = vld [vmem:[%s205_s7 + $0x8] sm:$0xff]  ;;  %v208_v4 = vld [vmem:[%s205_s7 + $0x10] sm:$0xff]  ;;  %s690_s5 = scalar_lea.vmem %s689_s30, 2048  ;;  %p691_p0 = scmp.lt.s32.totalorder %s906_s14, %s689_s30 }
  0x1c   : > { %617 = vmatprep.mubr.msk.f32.mxu0 %vm222_vm0, %v206_v2  ;;  %v361_v5 = vsel %vm222_vm0, %v206_v2, 0.0  ;;  %v362_v6 = vsel %vm222_vm0, %v207_v3, 0.0  ;;  %v364_v7 = vsel %vm222_vm0, %v208_v4, 0.0  ;;  %v209_v8 = vld [vmem:[%s205_s7 + $0x18] sm:$0xff]  ;;  %v210_v10 = vld [vmem:[%s205_s7 + $0x20] sm:$0xff]  ;;  %v212_v11 = vld [vmem:[%s205_s7 + $0x30] sm:$0xff]  ;;  %p692_p1 = scmp.lt.s32.totalorder %s690_s5, %s684_s28 }
  0x1d   : > { %v363_v9 = vadd.f32 %v362_v6, %v361_v5  ;;  %618 = vmatmul.mubr.msk.f32.vlgmr.msra.gmra.mrb[0].mxu0 %vm222_vm0, %v207_v3  ;;  %v366_v12 = vsel %vm222_vm0, %v209_v8, 0.0  ;;  %626 = vmatprep.mubr.msk.f32.mxu1 %vm222_vm0, %v212_v11  ;;  %v213_v13 = vld [vmem:[%s205_s7 + $0x38] sm:$0xff]  ;;  %v211_v15 = vld [vmem:[%s205_s7 + $0x28] sm:$0xff]  ;;  %v368_v16 = vsel %vm222_vm0, %v210_v10, 0.0  ;;  %v372_v20 = vsel %vm222_vm0, %v212_v11, 0.0 }
  0x1e   : > { %620 = vmatprep.mubr.msk.f32.mxu0 %vm222_vm0, %v208_v4  ;;  %627 = vmatmul.mubr.msk.f32.vlgmr.msra.gmra.mrb[0].mxu1 %vm222_vm0, %v213_v13  ;;  %v370_v18 = vsel %vm222_vm0, %v211_v15, 0.0  ;;  %v374_v22 = vsel %vm222_vm0, %v213_v13, 0.0  ;;  %p693_p2 = por %p692_p1, %p691_p0 }
  0x1f   : > { %v365_v14 = vadd.f32 %v364_v7, %v363_v9  ;;  %630 = vmatpush3.msra.mxu1 %v214_v0  ;;  %631 = vmatprep.mubr.msk.f32.mxu1 %vm781_vm1, %v780_v1 }
  0x20   : > { %p694_p3 = pnand %p693_p2, %p687_p13 }
  0x21   : > { %621 = vmatmul.mubr.msk.f32.gmra.mrb[2].mxu0 %vm222_vm0, %v209_v8  ;;  %v367_v17 = vadd.f32 %v366_v12, %v365_v14 }
  0x22   : > { %623 = vmatprep.mubr.msk.f32.mxu0 %vm222_vm0, %v210_v10 }
  0x23   : > { %v369_v19 = vadd.f32 %v368_v16, %v367_v17 }
  0x25   : > { %v371_v21 = vadd.f32 %v370_v18, %v369_v19  ;;  %624 = vmatmul.mubr.msk.f32.gmra.mrb[4].mxu0 %vm222_vm0, %v211_v15 }
  0x27   : > { %v373_v23 = vadd.f32 %v372_v20, %v371_v21 }
  0x29   : > { %v375_v24 = vadd.f32 %v374_v22, %v373_v23 }
  0x2b   : > { %v376_v25 = vrot.slane %v375_v24, 4 }
  0x2d   : > { %v377_v26 = vadd.f32 %v376_v25, %v375_v24 }
  0x2f   : > { %v378_v27 = vrot.slane %v377_v26, 2 }
  0x31   : > { %v379_v28 = vadd.f32 %v378_v27, %v377_v26 }
  0x33   : > { %v380_v29 = vrot.slane %v379_v28, 1 }
  0x35   : > { %v381_v30 = vadd.f32 %v380_v29, %v379_v28 }
  0x37   : > { %v383_v31 = vmul.f32 0.015625, %v381_v30 }
  0x39   : > { %632 = vmatmul.mubr.msk.f32.vlgmr.msra.gmra.mrb[2].mxu1 %vm222_vm0, %v383_v31 }
  0xf0   : > { %v619_v37 = vpop.f32.mrb[0].mxu0 }
  0xf1   : > { %v319_v38 = vadd.f32 %v619_v37, %v220_v36  ;;  %v313_v39 = vpop.f32.mrb[1].mxu0  ;;  %v628_v41 = vpop.f32.mrb[0].mxu1 }
  0xf2   : > { %v314_v40 = vadd.f32 %v313_v39, %v220_v36  ;;  %v349_v42 = vadd.f32 %v628_v41, %v220_v36  ;;  %v343_v43 = vpop.f32.mrb[1].mxu1 }
  0xf3   : > { %354 = vst.msk [vmem:[%s194_s12 + $0x8] sm:$0xff] %vm352_vm2, %v319_v38  ;;  %v344_v45 = vadd.f32 %v343_v43, %v220_v36 }
  0xf4   : > { %353 = vst.msk [vmem:[%s194_s12] sm:$0xff] %vm352_vm2, %v314_v40  ;;  %v622_v44 = vpop.f32.mrb[2].mxu0  ;;  %360 = vst.msk [vmem:[%s194_s12 + $0x38] sm:$0xff] %vm352_vm2, %v349_v42 }
  0xf5   : > { %v329_v46 = vadd.f32 %v622_v44, %v220_v36  ;;  %v323_v47 = vpop.f32.mrb[3].mxu0  ;;  %359 = vst.msk [vmem:[%s194_s12 + $0x30] sm:$0xff] %vm352_vm2, %v344_v45 }
  0xf6   : > { %v324_v48 = vadd.f32 %v323_v47, %v220_v36 }
  0xf7   : > { %356 = vst.msk [vmem:[%s194_s12 + $0x18] sm:$0xff] %vm352_vm2, %v329_v46 }
  0xf8   : > { %355 = vst.msk [vmem:[%s194_s12 + $0x10] sm:$0xff] %vm352_vm2, %v324_v48  ;;  %v625_v49 = vpop.f32.mrb[4].mxu0 }
  0xf9   : > { %v339_v50 = vadd.f32 %v625_v49, %v220_v36  ;;  %v333_v51 = vpop.f32.mrb[5].mxu0 }
  0xfa   : > { %v334_v52 = vadd.f32 %v333_v51, %v220_v36 }
  0xfb   : > { %358 = vst.msk [vmem:[%s194_s12 + $0x28] sm:$0xff] %vm352_vm2, %v339_v50 }
  0xfc   : > { %357 = vst.msk [vmem:[%s194_s12 + $0x20] sm:$0xff] %vm352_vm2, %v334_v52 }
  0xfd   : > { %697 = shalt.err (!%p694_p3)
}
  0xfe   : > { %s698_s6 = scalar_lea.hbm %s904_s23, 1024  ;;  %s702_s10 = scalar_lea.hbm %s986_s3, 2048 }
  0xff   : > { %p699_p4 = scmp.ne.s32.totalorder %s904_s23, %s698_s6  ;;  %p703_p9 = scmp.lt.u32.totalorder %s904_s23, %s986_s3 }
 0x100   : > { %p704_p10 = scmp.lt.u32.totalorder %s702_s10, %s698_s6  ;;  %p706_p12 = scmp.lt.u32.totalorder %s698_s6, %s904_s23 }
 0x101   : > { %p700_p7 = pnand %p699_p4, %p849_p5 }
 0x102   : > { %p705_p11 = por %p704_p10, %p703_p9 }
 0x103   : > { %p701_p8 = pneg %p700_p7 }
 0x104   : > { %p707_p13 = por %p706_p12, %p705_p11 }
 0x106   : > { %p708_p0 = pnand %p707_p13, %p701_p8 }
 0x108   : > { %711 = shalt.err (!%p708_p0)
}
 0x109   : > { %s783_s13 = smov 128   ;;  %s784_s20 = smov 8   ;;  %vm457_vm3 = vcmask 253952  }
 0x10a   : > { %636 = dma.vmem_to_hbm [thread:$0]  (%p849_p5), %s906_s14, 1024, %s904_s23, %s460_s27, %s783_s13, %s783_s13, %s784_s20  }
 0x10b   : > { %s599_s22 = sshll.u32 %s832_s19, 4  ;;  %s200_s28 = scalar_lea.vmem [#allocation4], %s885_s8 }
 0x10c   : > { %s493_s29 = sshll.u32 %s200_s28, 4  ;;  %v453_v53 = vpop.f32.mrb[2].mxu1  ;;  %s940_s6 = scalar_lea.hbm %s987_s4, %s599_s22  ;;  %s942_s29 = int_to_ptr.vmem [resolvable:$true] %s493_s29 }
 0x10d   : > { %v454_v54 = vadd.f32 %v453_v53, %v890_v35  ;;  %v633_v55 = vpop.f32.mrb[3].mxu1  ;;  %s465_s14 = scalar_lea.sflag [#allocation5], %s885_s8  ;;  %s712_s19 = scalar_lea.vmem %s942_s29, 16 }
 0x10e   : > { %p713_p1 = scmp.ne.s32.totalorder %s942_s29, %s712_s19  ;;  %s785_s23 = smov [#allocation4]  }
 0x10f   : > { %458 = vst.msk [vmem:[%s200_s28] sm:$0x1] %vm457_vm3, %v454_v54  ;;  %s716_s27 = sshll.u32 %s785_s23, 4  ;;  %s717_s27 = int_to_ptr.vmem [resolvable:$false] %s716_s27 }
 0x110   : > { %p714_p2 = pnand %p713_p1, %p849_p5  ;;  %s718_s7 = scalar_lea.vmem %s717_s27, 32 }
 0x111   : > { %p719_p4 = scmp.lt.s32.totalorder %s942_s29, %s717_s27  ;;  %p720_p7 = scmp.lt.s32.totalorder %s718_s7, %s712_s19 }
 0x112   : > { %p715_p3 = pneg %p714_p2 }
 0x113   : > { %p721_p8 = por %p720_p7, %p719_p4 }
 0x115   : > { %p722_p9 = pnand %p721_p8, %p715_p3 }
 0x117   : > { %725 = shalt.err (!%p722_p9)
}
 0x118   : > { %s726_s8 = scalar_lea.hbm %s940_s6, 16  ;;  %s730_s11 = scalar_lea.hbm %s987_s4, 32 }
 0x119   : > { %p727_p10 = scmp.ne.s32.totalorder %s940_s6, %s726_s8  ;;  %p731_p13 = scmp.lt.u32.totalorder %s940_s6, %s987_s4 }
 0x11a   : > { %p732_p0 = scmp.lt.u32.totalorder %s730_s11, %s726_s8  ;;  %p734_p2 = scmp.lt.u32.totalorder %s726_s8, %s940_s6 }
 0x11b   : > { %p728_p11 = pnand %p727_p10, %p849_p5 }
 0x11c   : > { %p733_p1 = por %p732_p0, %p731_p13 }
 0x11d   : > { %p729_p12 = pneg %p728_p11 }
 0x11e   : > { %p735_p3 = por %p734_p2, %p733_p1 }
 0x120   : > { %p736_p4 = pnand %p735_p3, %p729_p12 }
 0x122   : > { %739 = shalt.err (!%p736_p4)
}
 0x123   : > { %637 = dma.vmem_to_hbm [thread:$0]  (%p849_p5), %s942_s29, 16, %s940_s6, %s465_s14  }
 0x124 PF: > { %p647_p7 = scmp.ge.s32.totalorder %s778_s18, 2  ;;  %s505_s20 = sand.u32 1, %s766_s15  }
 0x125   : > { %s506_s22 = scalar_lea.sflag [#allocation3], %s505_s20 }
 0x126   : > { %p641_p8 = pnand %p647_p7, %p853_p6 }
 0x128   : > { %757 = dma.done.wait (!%p641_p8), %s506_s22, 1024  }
 0x129   : > { %759 = vsyncadd (!%p641_p8), %s506_s22, 4294966272  ;;  %s515_s28 = scalar_lea.sflag [#allocation5], %s505_s20 }
 0x12a   : > { %761 = dma.done.wait (!%p641_p8), %s515_s28, 16  }
 0x12b   : > { %763 = vsyncadd (!%p641_p8), %s515_s28, 4294967280  ;;  %p18_p5 = scmp.ge.s32.totalorder %s836_s21, 4   ;;  %s990_s15 = smov %s770_s16 }
 0x12c   : > { %s991_s16 = smov %s774_s17  ;;  %s992_s17 = smov %s847_s24 }
 0x12d   : > { %s993_s18 = smov %s836_s21  ;;  %20 = sbr.rel (!%p18_p5) target bundleno = 5 (0x5), region = 84 }
 0x134   :  { %519 = vsyncpa [#allocation3], 1 }
 0x135   :  { %521 = vsyncpa [#allocation3 + $0x1], 1 }
 0x136   :  { %522 = vsyncpa [#allocation5], 1 }
 0x137   :  { %524 = vsyncpa [#allocation5 + $0x1], 1 }

</bundles_post_ra>
